<compile_context>
chip_gen: v6e
topology: v6e:2x2x1
jax: 0.10.0
libtpu: 0.0.40
codegen_flags: <defaults>
</compile_context>

<pallas_src>
import functools

import jax
import jax.numpy as jnp
from jax import lax
from jax.experimental import pallas as pl
from jax.experimental.pallas import tpu as pltpu


def _round_up(a, b):
    return (a + b - 1) // b * b


# ---------------------------------------------------------------------------
# Kernel bodies
# ---------------------------------------------------------------------------
def _lin1_relu_ln(x_tile, w1_tile, b1_tile, *, eps, h_true, h_pad):
    """Linear(model_dim -> H) + ReLU + LayerNorm (TF-style: eps inside sqrt,
    biased variance), all in f32.

    gamma/beta are folded into W2/b2 by the host wrapper, so no affine here.
    Padded H lanes of W1/b1 are zero, so the mean reduction needs no mask;
    only the variance reduction does."""
    h = jnp.dot(x_tile, w1_tile, preferred_element_type=jnp.float32)
    h = jnp.maximum(h + b1_tile.astype(jnp.float32), 0.0)           # (tm, H_pad)

    inv_h = jnp.float32(1.0 / h_true)
    u = jnp.sum(h, axis=-1, keepdims=True) * inv_h                  # row mean
    d = h - u
    if h_pad != h_true:
        lane = lax.broadcasted_iota(jnp.int32, (1, h_pad), 1)
        d = jnp.where(lane < h_true, d, 0.0)                        # mask padded lanes
    var = jnp.sum(d * d, axis=-1, keepdims=True) * inv_h
    inv = lax.rsqrt(var + eps)                                       # EUP slot
    # One broadcasted FMA on h instead of materializing (h-u) and hn separately
    # (less VMEM/vreg pressure).  Garbage in padded lanes is cancelled by the
    # zero rows of the padded W2.
    return h * inv + (-u) * inv


def _ffn_kernel(x_ref, w1_ref, b1_ref, w2_ref, b2_ref, o_ref, *,
                eps, h_true, h_pad):
    """Resident-weights path: whole W1/W2 live in VMEM, single row grid."""
    hn = _lin1_relu_ln(x_ref[...], w1_ref[...], b1_ref[...],
                       eps=eps, h_true=h_true, h_pad=h_pad)
    # TODO(synk): training-mode dropout (stochastic masking via pltpu.prng_*) is
    # intentionally not applied -- inference / eval semantics (identity).
    out = jnp.dot(hn.astype(w2_ref.dtype), w2_ref[...],
                  preferred_element_type=jnp.float32)
    o_ref[...] = (out + b2_ref[...].astype(jnp.float32)).astype(o_ref.dtype)


def _ffn_kernel_ntiled(x_ref, w1_ref, b1_ref, w2_ref, b2_ref, o_ref, hn_ref, *,
                       eps, h_true, h_pad):
    """Output-column-tiled path for layers whose weights do not fit resident in
    VMEM: grid = (row tiles, N tiles).  Linear1 + ReLU + LN are computed once
    per row tile (j == 0), cached in VMEM scratch, and re-used for every W2
    column tile."""
    @pl.when(pl.program_id(1) == 0)
    def _():
        hn = _lin1_relu_ln(x_ref[...], w1_ref[...], b1_ref[...],
                           eps=eps, h_true=h_true, h_pad=h_pad)
        hn_ref[...] = hn.astype(hn_ref.dtype)

    out = jnp.dot(hn_ref[...], w2_ref[...], preferred_element_type=jnp.float32)
    o_ref[...] = (out + b2_ref[...].astype(jnp.float32)).astype(o_ref.dtype)


# ---------------------------------------------------------------------------
# Host wrapper
# ---------------------------------------------------------------------------
def positionwise_feed_forward(x, w1, b1, gamma, beta, w2, b2, *,
                              eps=1e-12, tm=None, tn=512,
                              matmul_dtype=jnp.bfloat16,
                              vmem_limit_bytes=None,
                              force_n_tiling=False):
    """x: [batch, seq, model_dim] -> [batch, seq, out_dim].

    matmul_dtype: dtype of the matmul operands (default bf16, the MXU-native
    format on v5e/v6e/v7x); accumulation and LayerNorm stay in f32.
    """
    B, S, D = x.shape
    H = w1.shape[1]            # 4 * d_hidden (LayerNorm axis)
    N = w2.shape[1]            # out_dim
    M = B * S
    out_dtype = x.dtype

    # ---- hardware-aware defaults (introspection only; never changes math) ----
    vmem_cap = 128 * 1024 * 1024
    try:
        vmem_cap = int(getattr(pltpu.get_tpu_info(), "vmem_capacity_bytes", vmem_cap))
    except Exception:
        pass                                    # keep conservative 128 MiB default
    is_small_vmem = vmem_cap <= 64 * 1024 * 1024    # v7x-class: 64 MiB/TC, 2 TCs
    if vmem_limit_bytes is None:
        # Leave headroom below the physical capacity (48 MiB on v7x, 96 MiB on v5e/v6e).
        vmem_limit_bytes = min(100 * 1024 * 1024, int(vmem_cap * 0.75))
    if tm is None:
        tm = 256 if is_small_vmem else 512

    # ---- host-side weight prep ------------------------------------------
    # Fold LN affine into the second linear:
    #   gamma*z + beta -> z @ (gamma[:,None]*W2) + (beta @ W2 + b2)
    w2_f32 = w2.astype(jnp.float32)
    w2_fold = gamma.astype(jnp.float32)[:, None] * w2_f32
    b2_fold = beta.astype(jnp.float32) @ w2_f32 + b2.astype(jnp.float32)
    b1_f32 = b1.astype(jnp.float32)

    mm_dtype = jnp.dtype(matmul_dtype) if matmul_dtype is not None else jnp.dtype(x.dtype)
    x = x.astype(mm_dtype)
    w1 = w1.astype(mm_dtype)
    w2_fold = w2_fold.astype(mm_dtype)

    # Lane-dense hidden / output dims (weights only: cheap one-time pads).
    H_pad = _round_up(H, 128)
    N_pad = _round_up(N, 128)
    if H_pad != H:
        w1 = jnp.pad(w1, ((0, 0), (0, H_pad - H)))
        b1_f32 = jnp.pad(b1_f32, (0, H_pad - H))
        w2_fold = jnp.pad(w2_fold, ((0, H_pad - H), (0, 0)))
    if N_pad != N:
        w2_fold = jnp.pad(w2_fold, ((0, 0), (0, N_pad - N)))
        b2_fold = jnp.pad(b2_fold, (0, N_pad - N))

    # The activation is NOT padded in HBM: the x block uses the full model_dim and
    # the Pallas block machinery masks the ragged last row tile (garbage rows are
    # row-independent and their output stores are discarded).
    x2 = x.reshape(M, D)
    b1_2 = b1_f32.reshape(1, H_pad)
    b2_2 = b2_fold.reshape(1, N_pad)

    # ---- row tile ----------------------------------------------------------
    row_granule = 16 if mm_dtype.itemsize < 4 else 8   # bf16 packs 16 rows / vreg
    tm = max(row_granule, _round_up(int(tm), row_granule))
    if is_small_vmem and M > 2 * row_granule:
        # Keep >= 2 row-grid steps so the "parallel" row axis can shard across
        # both v7x TensorCores instead of leaving one idle.
        tm = min(tm, _round_up(pl.cdiv(M, 2), row_granule))
    tm = min(tm, _round_up(M, row_granule))
    n_rows = pl.cdiv(M, tm)

    # ---- resident-weights vs N-tiled fallback ------------------------------
    # 2x accounts for default double-buffering of the (constant-index) weight blocks.
    weight_vmem = 2 * ((D * H_pad + H_pad * N_pad) * mm_dtype.itemsize
                       + (H_pad + N_pad) * 4)
    use_n_tiling = bool(force_n_tiling) or weight_vmem > int(0.4 * vmem_limit_bytes)

    cost = pl.CostEstimate(
        flops=2 * M * H_pad * (D + N_pad),
        transcendentals=M,                              # one rsqrt per row
        bytes_accessed=(x2.size * x2.dtype.itemsize
                        + w1.size * w1.dtype.itemsize
                        + w2_fold.size * w2_fold.dtype.itemsize
                        + (H_pad + N_pad) * 4
                        + M * N_pad * jnp.dtype(out_dtype).itemsize),
    )

    if not use_n_tiling:
        kernel = functools.partial(_ffn_kernel, eps=float(eps), h_true=H, h_pad=H_pad)
        out2 = pl.pallas_call(
            kernel,
            out_shape=jax.ShapeDtypeStruct((M, N_pad), out_dtype),
            grid_spec=pltpu.PrefetchScalarGridSpec(
                num_scalar_prefetch=0,
                grid=(n_rows,),
                in_specs=[
                    pl.BlockSpec((tm, D), lambda i: (i, 0)),         # x rows
                    pl.BlockSpec((D, H_pad), lambda i: (0, 0)),      # W1 (resident)
                    pl.BlockSpec((1, H_pad), lambda i: (0, 0)),      # b1
                    pl.BlockSpec((H_pad, N_pad), lambda i: (0, 0)),  # W2 (gamma folded)
                    pl.BlockSpec((1, N_pad), lambda i: (0, 0)),      # b2 (beta folded)
                ],
                out_specs=pl.BlockSpec((tm, N_pad), lambda i: (i, 0)),
            ),
            compiler_params=pltpu.CompilerParams(
                dimension_semantics=("parallel",),
                vmem_limit_bytes=vmem_limit_bytes),
            cost_estimate=cost,
        )(x2, w1, b1_2, w2_fold, b2_2)
    else:
        tn = min(_round_up(max(128, int(tn)), 128), N_pad)
        n_cols = pl.cdiv(N_pad, tn)
        kernel = functools.partial(_ffn_kernel_ntiled, eps=float(eps),
                                   h_true=H, h_pad=H_pad)
        out2 = pl.pallas_call(
            kernel,
            out_shape=jax.ShapeDtypeStruct((M, N_pad), out_dtype),
            grid_spec=pltpu.PrefetchScalarGridSpec(
                num_scalar_prefetch=0,
                grid=(n_rows, n_cols),
                in_specs=[
                    pl.BlockSpec((tm, D), lambda i, j: (i, 0)),       # x (re-used over j)
                    pl.BlockSpec((D, H_pad), lambda i, j: (0, 0)),    # W1
                    pl.BlockSpec((1, H_pad), lambda i, j: (0, 0)),    # b1
                    pl.BlockSpec((H_pad, tn), lambda i, j: (0, j)),   # W2 column tile
                    pl.BlockSpec((1, tn), lambda i, j: (0, j)),       # b2 column tile
                ],
                out_specs=pl.BlockSpec((tm, tn), lambda i, j: (i, j)),
                scratch_shapes=[pltpu.VMEM((tm, H_pad), mm_dtype)],   # cached LN(hidden)
            ),
            compiler_params=pltpu.CompilerParams(
                dimension_semantics=("parallel", "arbitrary"),
                vmem_limit_bytes=vmem_limit_bytes),
            cost_estimate=cost,
        )(x2, w1, b1_2, w2_fold, b2_2)

    if N_pad != N:
        out2 = out2[:, :N]
    return out2.reshape(B, S, N)


# ---------------------------------------------------------------------------
# Pure-JAX reference
# ---------------------------------------------------------------------------
def _reference(x, w1, b1, gamma, beta, w2, b2, eps=1e-12):
    h = jnp.maximum(x @ w1 + b1, 0.0)
    u = h.mean(-1, keepdims=True)
    s = ((h - u) ** 2).mean(-1, keepdims=True)
    hn = (h - u) / jnp.sqrt(s + eps)
    hn = gamma * hn + beta
    return hn @ w2 + b2


def _make_params(key, model_dim, d_hidden, out_dim):
    H = d_hidden * 4
    k_w1, k_b1, k_w2, k_b2 = jax.random.split(key, 4)
    lim1 = 1.0 / jnp.sqrt(model_dim)
    lim2 = 1.0 / jnp.sqrt(H)
    w1 = jax.random.uniform(k_w1, (model_dim, H), jnp.float32, -lim1, lim1)
    b1 = jax.random.uniform(k_b1, (H,), jnp.float32, -lim1, lim1)
    gamma = jnp.ones((H,), jnp.float32)    # LayerNorm.weight
    beta = jnp.zeros((H,), jnp.float32)    # LayerNorm.bias
    w2 = jax.random.uniform(k_w2, (H, out_dim), jnp.float32, -lim2, lim2)
    b2 = jax.random.uniform(k_b2, (out_dim,), jnp.float32, -lim2, lim2)
    return w1, b1, gamma, beta, w2, b2


if __name__ == "__main__":
    key = jax.random.PRNGKey(0)

    # ---- Test 1: module-default small shapes (H = 4*d_hidden = 128) ----------
    batch, seq = 2, 8
    model_dim, d_hidden, out_dim = 32, 32, 32
    k_x, k_p, k_x2, k_p2 = jax.random.split(key, 4)
    x = jax.random.normal(k_x, (batch, seq, model_dim), dtype=jnp.float32)
    w1, b1, gamma, beta, w2, b2 = _make_params(k_p, model_dim, d_hidden, out_dim)
    ref = _reference(x, w1, b1, gamma, beta, w2, b2)

    # Strict f32 matmul path.
    out_f32 = positionwise_feed_forward(x, w1, b1, gamma, beta, w2, b2,
                                        matmul_dtype=jnp.float32)
    out_f32 = jax.block_until_ready(out_f32)
    assert out_f32.shape == (batch, seq, out_dim)
    assert jnp.allclose(out_f32, ref, atol=1e-5, rtol=1e-5)

    # Default bf16-operand path (f32 accumulation) -- loose check.
    out_bf16 = positionwise_feed_forward(x, w1, b1, gamma, beta, w2, b2)
    out_bf16 = jax.block_until_ready(out_bf16)
    assert out_bf16.shape == (batch, seq, out_dim)
    assert jnp.allclose(out_bf16, ref, atol=1e-1, rtol=1e-1)

    # ---- Test 2: ragged M, non-128 H (masked LN) and the N-tiled fallback ----
    batch2, seq2 = 2, 9                     # M = 18 -> ragged last row tile
    model_dim2, d_hidden2, out_dim2 = 40, 24, 20   # H = 96 -> padded to 128
    xb = jax.random.normal(k_x2, (batch2, seq2, model_dim2), dtype=jnp.float32)
    p2 = _make_params(k_p2, model_dim2, d_hidden2, out_dim2)
    ref2 = _reference(xb, *p2)
    out2 = positionwise_feed_forward(xb, *p2, tm=16, force_n_tiling=True)
    out2 = jax.block_until_ready(out2)
    assert out2.shape == (batch2, seq2, out_dim2)
    assert jnp.allclose(out2, ref2, atol=1e-1, rtol=1e-1)

    print("KERNEL_OK")
</pallas_src>

<mosaic_0001>
module attributes {stable_mosaic.version = 11 : i64} {
  func.func @_ffn_kernel(%arg0: i32, %arg1: memref<16x32xf32, #tpu.memory_space<vmem>>, %arg2: memref<32x128xf32, #tpu.memory_space<vmem>>, %arg3: memref<1x128xf32, #tpu.memory_space<vmem>>, %arg4: memref<128x128xf32, #tpu.memory_space<vmem>>, %arg5: memref<1x128xf32, #tpu.memory_space<vmem>>, %arg6: memref<16x128xf32, #tpu.memory_space<vmem>>) attributes {dimension_semantics = [#tpu.dimension_semantics<parallel>], iteration_bounds = array<i64: 1>, scalar_prefetch = 0 : i64, scratch_operands = 0 : i64, tpu.core_type = #tpu.core_type<tc>, window_params = [{transform_indices = @transform_0, window_bounds = array<i64: 16, 32>}, {pipeline_mode = #tpu.pipeline_mode<synchronous>, transform_indices = @transform_1, window_bounds = array<i64: 32, 128>}, {pipeline_mode = #tpu.pipeline_mode<synchronous>, transform_indices = @transform_2, window_bounds = array<i64: 1, 128>}, {pipeline_mode = #tpu.pipeline_mode<synchronous>, transform_indices = @transform_3, window_bounds = array<i64: 128, 128>}, {pipeline_mode = #tpu.pipeline_mode<synchronous>, transform_indices = @transform_4, window_bounds = array<i64: 1, 128>}, {transform_indices = @transform_5, window_bounds = array<i64: 16, 128>}]} {
    %c0 = arith.constant 0 : index
    %c0_0 = arith.constant 0 : index
    %0 = vector.load %arg1[%c0, %c0_0] : memref<16x32xf32, #tpu.memory_space<vmem>>, vector<16x32xf32>
    %c0_1 = arith.constant 0 : index
    %c0_2 = arith.constant 0 : index
    %1 = vector.load %arg2[%c0_1, %c0_2] : memref<32x128xf32, #tpu.memory_space<vmem>>, vector<32x128xf32>
    %c0_3 = arith.constant 0 : index
    %c0_4 = arith.constant 0 : index
    %2 = vector.load %arg3[%c0_3, %c0_4] : memref<1x128xf32, #tpu.memory_space<vmem>>, vector<1x128xf32>
    %cst = arith.constant dense<0.000000e+00> : vector<16x128xf32>
    %3 = tpu.matmul %0, %1, %cst {dimension_numbers = #tpu.dot_dimension_numbers<[1], [0], [0], [1], [0, 0, 1, 1], [], []>} : vector<16x32xf32>, vector<32x128xf32>, vector<16x128xf32> -> vector<16x128xf32>
    %4 = vector.broadcast %2 : vector<1x128xf32> to vector<16x128xf32>
    %5 = arith.addf %3, %4 : vector<16x128xf32>
    %cst_5 = arith.constant 0.000000e+00 : f32
    %6 = vector.broadcast %cst_5 : f32 to vector<16x128xf32>
    %7 = arith.maximumf %5, %6 : vector<16x128xf32>
    %cst_6 = arith.constant dense<0.000000e+00> : vector<16xf32>
    %8 = vector.multi_reduction <add>, %7, %cst_6 [1] : vector<16x128xf32> to vector<16xf32>
    %9 = vector.shape_cast %8 : vector<16xf32> to vector<16x1xf32>
    %cst_7 = arith.constant 7.812500e-03 : f32
    %10 = vector.broadcast %cst_7 : f32 to vector<16x1xf32>
    %11 = arith.mulf %9, %10 : vector<16x1xf32>
    %12 = vector.broadcast %11 : vector<16x1xf32> to vector<16x128xf32>
    %13 = arith.subf %7, %12 : vector<16x128xf32>
    %14 = arith.mulf %13, %13 : vector<16x128xf32>
    %cst_8 = arith.constant dense<0.000000e+00> : vector<16xf32>
    %15 = vector.multi_reduction <add>, %14, %cst_8 [1] : vector<16x128xf32> to vector<16xf32>
    %16 = vector.shape_cast %15 : vector<16xf32> to vector<16x1xf32>
    %cst_9 = arith.constant 7.812500e-03 : f32
    %17 = vector.broadcast %cst_9 : f32 to vector<16x1xf32>
    %18 = arith.mulf %16, %17 : vector<16x1xf32>
    %cst_10 = arith.constant 9.99999996E-13 : f32
    %19 = vector.broadcast %cst_10 : f32 to vector<16x1xf32>
    %20 = arith.addf %18, %19 : vector<16x1xf32>
    %21 = math.rsqrt %20 : vector<16x1xf32>
    %22 = vector.broadcast %21 : vector<16x1xf32> to vector<16x128xf32>
    %23 = arith.mulf %7, %22 : vector<16x128xf32>
    %cst_11 = arith.constant 0.000000e+00 : f32
    %24 = vector.broadcast %cst_11 : f32 to vector<16x1xf32>
    %25 = arith.subf %24, %11 : vector<16x1xf32>
    %26 = arith.mulf %25, %21 : vector<16x1xf32>
    %27 = vector.broadcast %26 : vector<16x1xf32> to vector<16x128xf32>
    %28 = arith.addf %23, %27 : vector<16x128xf32>
    %c0_12 = arith.constant 0 : index
    %c0_13 = arith.constant 0 : index
    %29 = vector.load %arg4[%c0_12, %c0_13] : memref<128x128xf32, #tpu.memory_space<vmem>>, vector<128x128xf32>
    %cst_14 = arith.constant dense<0.000000e+00> : vector<16x128xf32>
    %30 = tpu.matmul %28, %29, %cst_14 {dimension_numbers = #tpu.dot_dimension_numbers<[1], [0], [0], [1], [0, 0, 1, 1], [], []>} : vector<16x128xf32>, vector<128x128xf32>, vector<16x128xf32> -> vector<16x128xf32>
    %c0_15 = arith.constant 0 : index
    %c0_16 = arith.constant 0 : index
    %31 = vector.load %arg5[%c0_15, %c0_16] : memref<1x128xf32, #tpu.memory_space<vmem>>, vector<1x128xf32>
    %32 = vector.broadcast %31 : vector<1x128xf32> to vector<16x128xf32>
    %33 = arith.addf %30, %32 : vector<16x128xf32>
    %c0_17 = arith.constant 0 : index
    %c0_18 = arith.constant 0 : index
    %34 = vector.load %arg6[%c0_17, %c0_18] : memref<16x128xf32, #tpu.memory_space<vmem>>, vector<16x128xf32>
    tpu.vector_store %arg6[%c0_17, %c0_18], %33 {strides = array<i32>} : memref<16x128xf32, #tpu.memory_space<vmem>>, vector<16x128xf32>,
    return
  }
  func.func @transform_0(%arg0: i32) -> (i32, i32) {
    %c0_i32 = arith.constant 0 : i32
    %c0_i32_0 = arith.constant 0 : i32
    return %arg0, %c0_i32 : i32, i32
  }
  func.func @transform_1(%arg0: i32) -> (i32, i32) {
    %c0_i32 = arith.constant 0 : i32
    %c0_i32_0 = arith.constant 0 : i32
    %c0_i32_1 = arith.constant 0 : i32
    return %c0_i32, %c0_i32_0 : i32, i32
  }
  func.func @transform_2(%arg0: i32) -> (i32, i32) {
    %c0_i32 = arith.constant 0 : i32
    %c0_i32_0 = arith.constant 0 : i32
    %c0_i32_1 = arith.constant 0 : i32
    return %c0_i32, %c0_i32_0 : i32, i32
  }
  func.func @transform_3(%arg0: i32) -> (i32, i32) {
    %c0_i32 = arith.constant 0 : i32
    %c0_i32_0 = arith.constant 0 : i32
    %c0_i32_1 = arith.constant 0 : i32
    return %c0_i32, %c0_i32_0 : i32, i32
  }
  func.func @transform_4(%arg0: i32) -> (i32, i32) {
    %c0_i32 = arith.constant 0 : i32
    %c0_i32_0 = arith.constant 0 : i32
    %c0_i32_1 = arith.constant 0 : i32
    return %c0_i32, %c0_i32_0 : i32, i32
  }
  func.func @transform_5(%arg0: i32) -> (i32, i32) {
    %c0_i32 = arith.constant 0 : i32
    %c0_i32_0 = arith.constant 0 : i32
    return %arg0, %c0_i32 : i32, i32
  }
}

</mosaic_0001>

<bundles_post_ra>
// kernel: tpu_custom_call.1
= control target key start
LH: loop header
LB: loop body
LE: loop exit
PB: predicated region body
PF: predicated region fallthrough
CT: control target
= control target key end

     0   :  { %10 = vsyncpa [#allocation3], 0  ;;  %s557_s0 = inlined_call_operand.hbm [shape: f32[16,32], index: 0, kind: input, shape index: {}]   ;;  %s558_s1 = inlined_call_operand.hbm [shape: f32[32,128], index: 1, kind: input, shape index: {}]   ;;  %s559_s2 = inlined_call_operand.vmem [shape: f32[1,128], index: 2, kind: input, shape index: {}]   ;;  %s560_s3 = inlined_call_operand.hbm [shape: f32[128,128], index: 3, kind: input, shape index: {}]   ;;  %s561_s4 = inlined_call_operand.vmem [shape: f32[1,128], index: 4, kind: input, shape index: {}]   ;;  %s562_s5 = inlined_call_operand.hbm [shape: f32[16,128], index: 5, kind: output, shape index: {}]  }
   0x1   :  { %11 = vsyncpa [#allocation6], 0 }
   0x2   :  { %12 = vsyncpa [#allocation4], 0  ;;  %s475_s18 = smov [#allocation5]   ;;  %s476_s20 = smov [#allocation2]  }
   0x3   :  { %s30_s19 = sshll.u32 %s475_s18, 4  ;;  %s18_s21 = sshll.u32 %s476_s20, 4  ;;  %s31_s19 = int_to_ptr.vmem [resolvable:$true] %s30_s19  ;;  %s19_s21 = int_to_ptr.vmem [resolvable:$true] %s18_s21 }
   0x4   :  { %s397_s22 = scalar_lea.vmem %s31_s19, 512  ;;  %p402_p1 = scmp.lt.s32.totalorder %s31_s19, %s31_s19 }
   0x5   :  { %p398_p0 = scmp.ne.s32.totalorder %s31_s19, %s397_s22  ;;  %p403_p2 = scmp.lt.s32.totalorder %s397_s22, %s397_s22 }
   0x7   :  { %p404_p3 = por %p403_p2, %p402_p1 }
   0x9   :  { %p405_p4 = pnand %p404_p3, %p398_p0 }
   0xb   :  { %408 = shalt.err (!%p405_p4)
}
   0xc   :  { %s477_s23 = smov 128   ;;  %s478_s24 = smov 8  }
   0xd   :  { %36 = dma.hbm_to_vmem [thread:$0]  %s558_s1, 512, %s31_s19, [#allocation6], %s477_s23, %s477_s23, %s478_s24  }
   0xe   :  { %s417_s27 = scalar_lea.vmem %s19_s21, 256  ;;  %p422_p6 = scmp.lt.s32.totalorder %s19_s21, %s19_s21 }
   0xf   :  { %p418_p5 = scmp.ne.s32.totalorder %s19_s21, %s417_s27  ;;  %p423_p7 = scmp.lt.s32.totalorder %s417_s27, %s417_s27 }
  0x11   :  { %p424_p8 = por %p423_p7, %p422_p6 }
  0x13   :  { %p425_p9 = pnand %p424_p8, %p418_p5 }
  0x15   :  { %428 = shalt.err (!%p425_p9)
}
  0x16   :  { %24 = dma.hbm_to_vmem [thread:$0]  %s557_s0, 256, %s19_s21, [#allocation3], %s477_s23, %s477_s23, %s478_s24  }
  0x17   :  { %s479_s30 = smov [#allocation7]  }
  0x18   :  { %s44_s6 = sshll.u32 %s479_s30, 4  ;;  %s45_s6 = int_to_ptr.vmem [resolvable:$true] %s44_s6 }
  0x19   :  { %s437_s7 = scalar_lea.vmem %s45_s6, 2048  ;;  %p442_p11 = scmp.lt.s32.totalorder %s45_s6, %s45_s6 }
  0x1a   :  { %p438_p10 = scmp.ne.s32.totalorder %s45_s6, %s437_s7  ;;  %p443_p12 = scmp.lt.s32.totalorder %s437_s7, %s437_s7 }
  0x1c   :  { %p444_p13 = por %p443_p12, %p442_p11 }
  0x1e   :  { %p445_p0 = pnand %p444_p13, %p438_p10 }
  0x20   :  { %448 = shalt.err (!%p445_p0)
}
  0x21   :  { %50 = dma.hbm_to_vmem [thread:$0]  %s560_s3, 2048, %s45_s6, [#allocation6], %s477_s23, %s477_s23, %s478_s24  }
  0x22   :  { %469 = dma.done.wait [#allocation3], 256  }
  0x23   :  { %470 = vsyncadd [#allocation3], 4294967040 }
  0x24   :  { %471 = dma.done.wait [#allocation6], 2560  }
  0x25   :  { %472 = vsyncadd [#allocation6], 4294964736  ;;  %vm75_vm0 = vcmask 261120   ;;  %v67_v0 = vld [vmem:[#allocation5 + $0x18] sm:$0xff]  ;;  %v66_v1 = vld [vmem:[#allocation5 + $0x10] sm:$0xff]  ;;  %s480_s10 = smov [#allocation8]  }
  0x26   :  { %333 = vmatprep.subr.mxu0 %v67_v0  ;;  %v62_v2 = vld [vmem:[#allocation2] sm:$0xff]  ;;  %v65_v3 = vld [vmem:[#allocation5 + $0x8] sm:$0xff]  ;;  %v64_v4 = vld [vmem:[#allocation5] sm:$0xff]  ;;  %s292_s11 = sshll.u32 %s480_s10, 4  ;;  %s293_s11 = int_to_ptr.vmem [resolvable:$true] %s292_s11 }
  0x27   :  { %334 = vmatpush3.msra.mxu0 %v67_v0  ;;  %341 = vmatprep.mubr.msk.f32.mxu0 %vm75_vm0, %v62_v2  ;;  %v63_v5 = vld [vmem:[#allocation2 + $0x8] sm:$0xff]  ;;  %v305_v7 = vld [vmem:[%s559_s2] ss:$0 sm:$0xff]  ;;  %v200_v15 = vld [vmem:[#allocation7 + $0x68] sm:$0xff]  ;;  %s449_s12 = scalar_lea.vmem %s293_s11, 256  ;;  %p454_p2 = scmp.lt.s32.totalorder %s293_s11, %s293_s11 }
  0x28   :  { %335 = vmatprep.subr.mxu0 %v66_v1  ;;  %v202_v13 = vld [vmem:[#allocation7 + $0x78] sm:$0xff]  ;;  %v201_v14 = vld [vmem:[#allocation7 + $0x70] sm:$0xff]  ;;  %v199_v24 = vld [vmem:[#allocation7 + $0x60] sm:$0xff]  ;;  %p450_p1 = scmp.ne.s32.totalorder %s293_s11, %s449_s12  ;;  %p455_p3 = scmp.lt.s32.totalorder %s449_s12, %s449_s12 }
  0x29   :  { %336 = vmatpush3.msra.mxu0 %v66_v1  ;;  %344 = vmatprep.subr.mxu1 %v202_v13  ;;  %v198_v25 = vld [vmem:[#allocation7 + $0x58] sm:$0xff]  ;;  %v197_v26 = vld [vmem:[#allocation7 + $0x50] sm:$0xff]  ;;  %v196_v27 = vld [vmem:[#allocation7 + $0x48] sm:$0xff] }
  0x2a   :  { %337 = vmatprep.subr.mxu0 %v65_v3  ;;  %345 = vmatpush3.msra.mxu1 %v202_v13  ;;  %v195_v28 = vld [vmem:[#allocation7 + $0x40] sm:$0xff]  ;;  %v194_v29 = vld [vmem:[#allocation7 + $0x38] sm:$0xff]  ;;  %v193_v30 = vld [vmem:[#allocation7 + $0x30] sm:$0xff]  ;;  %p456_p4 = por %p455_p3, %p454_p2 }
  0x2b   :  { %338 = vmatpush3.msra.mxu0 %v65_v3  ;;  %346 = vmatprep.subr.mxu1 %v201_v14  ;;  %v192_v31 = vld [vmem:[#allocation7 + $0x28] sm:$0xff]  ;;  %v191_v32 = vld [vmem:[#allocation7 + $0x20] sm:$0xff]  ;;  %v190_v33 = vld [vmem:[#allocation7 + $0x18] sm:$0xff] }
  0x2c   :  { %339 = vmatprep.subr.mxu0 %v64_v4  ;;  %347 = vmatpush3.msra.mxu1 %v201_v14  ;;  %v189_v34 = vld [vmem:[#allocation7 + $0x10] sm:$0xff]  ;;  %v188_v35 = vld [vmem:[#allocation7 + $0x8] sm:$0xff]  ;;  %v187_v36 = vld [vmem:[#allocation7] sm:$0xff]  ;;  %p457_p5 = pnand %p456_p4, %p450_p1 }
  0x2d   :  { %340 = vmatpush3.msra.mxu0 %v64_v4  ;;  %348 = vmatprep.subr.mxu1 %v200_v15  ;;  %v308_v53 = vld [vmem:[%s561_s4] ss:$0 sm:$0xff] }
  0x2e   :  { %342 = vmatmul.mubr.msk.f32.vlgmr.msra.gmra.mxu0 %vm75_vm0, %v63_v5  ;;  %349 = vmatpush3.msra.mxu1 %v200_v15 }
  0x2f   :  { %350 = vmatprep.subr.mxu1 %v199_v24 }
  0x30   :  { %351 = vmatpush3.msra.mxu1 %v199_v24 }
  0x31   :  { %352 = vmatprep.subr.mxu1 %v198_v25 }
  0x32   :  { %353 = vmatpush3.msra.mxu1 %v198_v25 }
  0x33   :  { %354 = vmatprep.subr.mxu1 %v197_v26 }
  0x34   :  { %355 = vmatpush3.msra.mxu1 %v197_v26 }
  0x35   :  { %356 = vmatprep.subr.mxu1 %v196_v27 }
  0x36   :  { %357 = vmatpush3.msra.mxu1 %v196_v27 }
  0x37   :  { %358 = vmatprep.subr.mxu1 %v195_v28 }
  0x38   :  { %359 = vmatpush3.msra.mxu1 %v195_v28 }
  0x39   :  { %360 = vmatprep.subr.mxu1 %v194_v29 }
  0x3a   :  { %361 = vmatpush3.msra.mxu1 %v194_v29 }
  0x3b   :  { %362 = vmatprep.subr.mxu1 %v193_v30 }
  0x3c   :  { %363 = vmatpush3.msra.mxu1 %v193_v30 }
  0x3d   :  { %364 = vmatprep.subr.mxu1 %v192_v31 }
  0x3e   :  { %365 = vmatpush3.msra.mxu1 %v192_v31 }
  0x3f   :  { %366 = vmatprep.subr.mxu1 %v191_v32 }
  0x40   :  { %367 = vmatpush3.msra.mxu1 %v191_v32 }
  0x41   :  { %368 = vmatprep.subr.mxu1 %v190_v33 }
  0x42   :  { %369 = vmatpush3.msra.mxu1 %v190_v33 }
  0x43   :  { %370 = vmatprep.subr.mxu1 %v189_v34 }
  0x44   :  { %371 = vmatpush3.msra.mxu1 %v189_v34 }
  0x45   :  { %372 = vmatprep.subr.mxu1 %v188_v35 }
  0x46   :  { %373 = vmatpush3.msra.mxu1 %v188_v35 }
  0x47   :  { %374 = vmatprep.subr.mxu1 %v187_v36 }
  0x48   :  { %375 = vmatpush3.msra.mxu1 %v187_v36 }
  0xee   :  { %v343_v6 = vpop.f32.mrf.mxu0 }
  0xef   :  { %v154_v10 = vadd.f32 %v343_v6, %v305_v7 }
  0xf0   :  { %v148_v8 = vpop.f32.mrf.mxu0 }
  0xf1   :  { %v149_v9 = vadd.f32 %v305_v7, %v148_v8  ;;  %v537_v12 = vmax.f32 %v154_v10, 0.0 }
  0xf3   :  { %v534_v11 = vmax.f32 %v149_v9, 0.0 }
  0xf5   :  { %159 = vadd.xlane.f32.xlu0 %v534_v11 }
  0xf9   :  { %161 = vadd.xlane.f32.xlu0 %v537_v12 }
 0x17e   :  { %v160_v16 = vpop.xlane.xlu0 %159 }
 0x17f   :  { %v163_v17 = vmul.f32 0.0078125, %v160_v16 }
 0x181   :  { %v165_v18 = vsub.f32 %v534_v11, %v163_v17  ;;  %v181_v43 = vsub.f32 0.0, %v163_v17 }
 0x182   :  { %v162_v19 = vpop.xlane.xlu0 %161 }
 0x183   :  { %v541_v20 = vmul.f32 0.0078125, %v162_v19  ;;  %v167_v21 = vmul.f32 %v165_v18, %v165_v18 }
 0x185   :  { %v166_v22 = vsub.f32 %v537_v12, %v541_v20  ;;  %169 = vadd.xlane.f32.xlu1 %v167_v21  ;;  %v182_v47 = vsub.f32 0.0, %v541_v20 }
 0x187   :  { %v168_v23 = vmul.f32 %v166_v22, %v166_v22 }
 0x189   :  { %171 = vadd.xlane.f32.xlu1 %v168_v23 }
 0x20e   :  { %v170_v37 = vpop.xlane.xlu1 %169 }
 0x20f   :  { %v173_v38 = vmul.f32 0.0078125, %v170_v37 }
 0x211   :  { %v175_v39 = vadd.f32 1e-12, %v173_v38 }
 0x212   :  { %v172_v40 = vpop.xlane.xlu1 %171 }
 0x213   :  { %385 = vrsqrt.f32 %v175_v39  ;;  %v174_v41 = vmul.f32 0.0078125, %v172_v40 }
 0x215   :  { %v176_v42 = vadd.f32 1e-12, %v174_v41 }
 0x217   :  { %387 = vrsqrt.f32 %v176_v42 }
 0x220   :  { %v386_v44 = vpop.eup %385 }
 0x221   :  { %v179_v45 = vmul.f32 %v386_v44, %v534_v11  ;;  %v183_v46 = vmul.f32 %v386_v44, %v181_v43 }
 0x223   :  { %v185_v48 = vadd.f32 %v183_v46, %v179_v45 }
 0x224   :  { %v388_v49 = vpop.eup %387 }
 0x225   :  { %376 = vmatprep.mubr.f32.mxu1 %v185_v48  ;;  %v180_v50 = vmul.f32 %v388_v49, %v537_v12  ;;  %v184_v51 = vmul.f32 %v388_v49, %v182_v47 }
 0x227   :  { %v186_v52 = vadd.f32 %v184_v51, %v180_v50 }
 0x229   :  { %377 = vmatmul.mubr.f32.vlgmr.msra.gmra.mxu1 %v186_v52 }
 0x2e9   :  { %v378_v54 = vpop.f32.mrf.mxu1 }
 0x2ea   :  { %v282_v55 = vadd.f32 %v378_v54, %v308_v53 }
 0x2eb   :  { %v276_v56 = vpop.f32.mrf.mxu1 }
 0x2ec   :  { %286 = vst [vmem:[#allocation8 + $0x8] sm:$0xff] %v282_v55  ;;  %v277_v57 = vadd.f32 %v308_v53, %v276_v56 }
 0x2ee   :  { %285 = vst [vmem:[#allocation8] sm:$0xff] %v277_v57 }
 0x2ef   :  { %460 = shalt.err (!%p457_p5)
}
 0x2f0   :  { %298 = dma.vmem_to_hbm [thread:$0]  %s293_s11, 256, %s562_s5, [#allocation4], %s477_s23, %s477_s23, %s478_s24  }
 0x2f1   :  { %473 = dma.done.wait [#allocation4], 256  }
 0x2f2   :  { %474 = vsyncadd [#allocation4], 4294967040 }
 0x2f3   :  { %302 = vsyncpa [#allocation3], 1 }
 0x2f4   :  { %303 = vsyncpa [#allocation6], 1 }
 0x2f5   :  { %304 = vsyncpa [#allocation4], 1 }

</bundles_post_ra>
